<compile_context>
chip_gen: v5e
topology: v5e:2x2
jax: 0.10.0
libtpu: 0.0.40
codegen_flags: <defaults>
</compile_context>

<pallas_src>
import functools
import math

import jax
import jax.numpy as jnp
from jax.experimental import pallas as pl
from jax.experimental.pallas import tpu as pltpu


def _logit_transform_back_kernel(x_ref, mask_ref, o_ref, *, half_inv_factor):
    # x_ref:    (block_rows, block_cols) tile in VMEM
    # mask_ref: (1, block_cols) tile in VMEM (x dtype; 0 => pass-through)
    x = x_ref[...]
    # sigmoid(x / factor) == 0.5 * tanh(x * (0.5 / factor)) + 0.5  (single EUP op)
    z = x.astype(jnp.float32) * half_inv_factor
    sig = (0.5 * jnp.tanh(z) + 0.5).astype(x.dtype)
    o_ref[...] = jnp.where(mask_ref[...] != 0, sig, x)


def _device_info():
    """Returns (tensorcores_per_chip, target_tile_bytes)."""
    try:
        kind = jax.devices()[0].device_kind.lower()
    except Exception:
        kind = ""
    if "v7" in kind:
        # 2 TCs/chip, 64 MiB VMEM per TC -> keep tiles a bit smaller.
        return 2, 4 << 20
    # v5e / v6e: single TC, 128 MiB VMEM -> larger streaming tiles.
    return 1, 6 << 20


def _choose_tiles(n_rows, n_cols, itemsize, num_cores, target_bytes):
    """Pick (block_rows, block_cols) for a streaming elementwise kernel."""
    pack = max(8, 32 // itemsize)  # sublane packing: 8 f32, 16 bf16, 32 int8

    # Column tile. If n_cols is not a 128-multiple we either take the full
    # extent (legal) or a 128-multiple with a masked ragged edge block.
    max_cols = max(128, (target_bytes // (pack * itemsize)) // 128 * 128)
    if n_cols % 128 == 0:
        block_cols = n_cols if n_cols <= max_cols else max_cols
    else:
        block_cols = n_cols if n_cols * pack * itemsize <= target_bytes else max_cols

    # Row tile: fill up to ~target_bytes, rounded to the pack granularity.
    if n_rows <= pack:
        block_rows = n_rows  # full extent (allowed even if < 8)
    else:
        br = max(pack, target_bytes // (block_cols * itemsize))
        block_rows = max(pack, min(n_rows, (br // pack) * pack))
        if num_cores > 1:
            # v7x megacore: just need >= num_cores blocks on a parallel axis.
            while pl.cdiv(n_rows, block_rows) < num_cores and block_rows > pack:
                block_rows = max(pack, (block_rows // 2 // pack) * pack)
        # Single-TC chips (v5e/v6e): never fragment — big tiles win.
    return block_rows, block_cols


def logit_transform_back(x, mask, factor=1.0):
    """x: (N, D) float array; mask: (D,) bool array; factor: python float."""
    N, D = x.shape
    itemsize = jnp.dtype(x.dtype).itemsize
    half_inv_factor = float(0.5 / float(factor))

    num_cores, target_bytes = _device_info()

    # --- layout plumbing: zero-copy lane-dense reshape when possible --------
    x_work, mask_work, reshaped = x, mask, False
    if D % 128 != 0:
        k = 128 // math.gcd(D, 128)
        if N % k == 0:
            # Row-major zero-copy reshape: (N, D) -> (N//k, k*D); new column j
            # maps to original column j % D, so tile the mask k times.
            x_work = x.reshape(N // k, k * D)
            mask_work = jnp.tile(mask, k)
            reshaped = True
        # else: tile (N, D) directly — no pad copy, no output slice.

    R, C = x_work.shape
    mask2d = mask_work.astype(x.dtype).reshape(1, C)

    block_rows, block_cols = _choose_tiles(R, C, itemsize, num_cores, target_bytes)
    grid = (pl.cdiv(R, block_rows), pl.cdiv(C, block_cols))

    # VMEM budget from actual usage: double-buffered x tile + out tile + mask
    # row, plus slack for compiler scratch. Clamp to <= 32 MiB (v7x-safe).
    tile_bytes = block_rows * block_cols * itemsize
    vmem_limit = int(min(max(2 * (2 * tile_bytes + block_cols * itemsize)
                             + (4 << 20), 16 << 20), 32 << 20))

    kernel = functools.partial(_logit_transform_back_kernel,
                               half_inv_factor=half_inv_factor)

    out = pl.pallas_call(
        kernel,
        out_shape=jax.ShapeDtypeStruct((R, C), x.dtype),
        grid=grid,
        in_specs=[
            pl.BlockSpec((block_rows, block_cols), lambda i, j: (i, j)),  # x tile
            pl.BlockSpec((1, block_cols), lambda i, j: (0, j)),           # mask row
        ],
        out_specs=pl.BlockSpec((block_rows, block_cols), lambda i, j: (i, j)),
        compiler_params=pltpu.CompilerParams(
            dimension_semantics=("parallel", "parallel"),
            vmem_limit_bytes=vmem_limit,
        ),
        cost_estimate=pl.CostEstimate(
            flops=4 * R * C,
            transcendentals=R * C,
            bytes_accessed=2 * R * C * itemsize + grid[0] * C * itemsize,
        ),
    )(x_work, mask2d)

    if reshaped:
        out = out.reshape(N, D)
    return out


if __name__ == "__main__":
    key = jax.random.PRNGKey(0)
    factor = 1.5

    # Main case: D % 128 != 0, N % k == 0 -> exercises the zero-copy reshape path.
    N, D = 16, 32
    x = jax.random.normal(key, (N, D), dtype=jnp.float32)
    mask = (jnp.arange(D) % 2 == 0)  # deterministic alternating mask
    out = jax.block_until_ready(logit_transform_back(x, mask, factor))
    ref = jnp.where(mask[None, :], jax.nn.sigmoid(x / factor), x)
    assert out.shape == (N, D) and out.dtype == x.dtype
    assert jnp.allclose(out, ref, atol=1e-5, rtol=1e-5)

    # Secondary case: N % k != 0 -> exercises the direct (no-pad) ragged path.
    N2, D2 = 7, 32
    x2 = jax.random.normal(jax.random.PRNGKey(1), (N2, D2), dtype=jnp.float32)
    mask2 = (jnp.arange(D2) % 3 == 0)
    out2 = jax.block_until_ready(logit_transform_back(x2, mask2, factor))
    ref2 = jnp.where(mask2[None, :], jax.nn.sigmoid(x2 / factor), x2)
    assert jnp.allclose(out2, ref2, atol=1e-5, rtol=1e-5)

    print("KERNEL_OK")
</pallas_src>

<mosaic_0001>
module attributes {stable_mosaic.version = 11 : i64} {
  func.func @_logit_transform_back_kernel(%arg0: i32, %arg1: i32, %arg2: memref<4x128xf32, #tpu.memory_space<vmem>>, %arg3: memref<1x128xf32, #tpu.memory_space<vmem>>, %arg4: memref<4x128xf32, #tpu.memory_space<vmem>>) attributes {dimension_semantics = [#tpu.dimension_semantics<parallel>, #tpu.dimension_semantics<parallel>], iteration_bounds = array<i64: 1, 1>, scalar_prefetch = 0 : i64, scratch_operands = 0 : i64, tpu.core_type = #tpu.core_type<tc>, window_params = [{transform_indices = @transform_0, window_bounds = array<i64: 4, 128>}, {transform_indices = @transform_1, window_bounds = array<i64: 1, 128>}, {transform_indices = @transform_2, window_bounds = array<i64: 4, 128>}]} {
    %c0 = arith.constant 0 : index
    %c0_0 = arith.constant 0 : index
    %0 = vector.load %arg2[%c0, %c0_0] : memref<4x128xf32, #tpu.memory_space<vmem>>, vector<4x128xf32>
    %cst = arith.constant 0.333333343 : f32
    %1 = vector.broadcast %cst : f32 to vector<4x128xf32>
    %2 = arith.mulf %0, %1 : vector<4x128xf32>
    %3 = math.tanh %2 : vector<4x128xf32>
    %cst_1 = arith.constant 5.000000e-01 : f32
    %4 = vector.broadcast %cst_1 : f32 to vector<4x128xf32>
    %5 = arith.mulf %4, %3 : vector<4x128xf32>
    %cst_2 = arith.constant 5.000000e-01 : f32
    %6 = vector.broadcast %cst_2 : f32 to vector<4x128xf32>
    %7 = arith.addf %5, %6 : vector<4x128xf32>
    %c0_3 = arith.constant 0 : index
    %c0_4 = arith.constant 0 : index
    %8 = vector.load %arg3[%c0_3, %c0_4] : memref<1x128xf32, #tpu.memory_space<vmem>>, vector<1x128xf32>
    %cst_5 = arith.constant 0.000000e+00 : f32
    %9 = vector.broadcast %cst_5 : f32 to vector<1x128xf32>
    %10 = arith.cmpf one, %8, %9 : vector<1x128xf32>
    %11 = vector.shape_cast %10 : vector<1x128xi1> to vector<1x128xi1>
    %12 = vector.broadcast %11 : vector<1x128xi1> to vector<4x128xi1>
    %13 = arith.select %12, %7, %0 : vector<4x128xi1>, vector<4x128xf32>
    %c0_6 = arith.constant 0 : index
    %c0_7 = arith.constant 0 : index
    %14 = vector.load %arg4[%c0_6, %c0_7] : memref<4x128xf32, #tpu.memory_space<vmem>>, vector<4x128xf32>
    tpu.vector_store %arg4[%c0_6, %c0_7], %13 {strides = array<i32>} : memref<4x128xf32, #tpu.memory_space<vmem>>, vector<4x128xf32>,
    return
  }
  func.func @transform_0(%arg0: i32, %arg1: i32) -> (i32, i32) {
    %c0_i32 = arith.constant 0 : i32
    return %arg0, %arg1 : i32, i32
  }
  func.func @transform_1(%arg0: i32, %arg1: i32) -> (i32, i32) {
    %c0_i32 = arith.constant 0 : i32
    %c0_i32_0 = arith.constant 0 : i32
    return %c0_i32, %arg1 : i32, i32
  }
  func.func @transform_2(%arg0: i32, %arg1: i32) -> (i32, i32) {
    %c0_i32 = arith.constant 0 : i32
    return %arg0, %arg1 : i32, i32
  }
}

</mosaic_0001>

<bundles_post_ra>
// kernel: tpu_custom_call.1
= control target key start
LH: loop header
LB: loop body
LE: loop exit
PB: predicated region body
PF: predicated region fallthrough
CT: control target
= control target key end

     0   :  { %7 = vsyncpa [#allocation3], 0  ;;  %s182_s0 = inlined_call_operand.hbm [shape: f32[4,128], index: 0, kind: input, shape index: {}]   ;;  %s183_s1 = inlined_call_operand.hbm [shape: f32[1,128], index: 1, kind: input, shape index: {}]   ;;  %s184_s2 = inlined_call_operand.hbm [shape: f32[4,128], index: 2, kind: output, shape index: {}]  }
   0x1   :  { %8 = vsyncpa [#allocation6], 0 }
   0x2   :  { %9 = vsyncpa [#allocation4], 0  ;;  %s15_s11 = sshll.u32 %s182_s0, 4  ;;  %s154_s12 = smov [#allocation2]   ;;  %s16_s11 = int_to_ptr.hbm [resolvable:$true] %s15_s11 }
   0x3   :  { %s17_s13 = sshll.u32 %s154_s12, 4  ;;  %s26_s16 = sshll.u32 %s183_s1, 4  ;;  %s18_s13 = int_to_ptr.vmem [resolvable:$true] %s17_s13  ;;  %s27_s16 = int_to_ptr.hbm [resolvable:$true] %s26_s16 }
   0x4   :  { %20 = dma.hbm_to_vmem [thread:$0]  %s16_s11, 64, %s18_s13, [#allocation3]  }
   0x5   :  { %s155_s17 = smov [#allocation5]  }
   0x6   :  { %s28_s18 = sshll.u32 %s155_s17, 4  ;;  %s29_s18 = int_to_ptr.vmem [resolvable:$true] %s28_s18 }
   0x7   :  { %31 = dma.hbm_to_vmem [thread:$0]  %s27_s16, 16, %s29_s18, [#allocation6]  }
   0x8   :  { %148 = dma.done.wait [#allocation3], 64  }
   0x9   :  { %149 = vsyncadd [#allocation3], 4294967232 }
   0xa   :  { %150 = dma.done.wait [#allocation6], 16  }
   0xb   :  { %151 = vsyncadd [#allocation6], 4294967280  ;;  %v40_v0 = vld [vmem:[#allocation2] sm:$0xf]  ;;  %v45_v1 = vld [vmem:[#allocation5] sm:$0x1] }
   0xc   :  { %v41_v2 = vmul.f32 0.33333334, %v40_v0  ;;  %vm46_vm0 = vcmp.ne.f32.partialorder %v45_v1, 0.0  ;;  %v156_v3 = vmov 0   ;;  %s157_s0 = smov [#allocation7]   ;;  %s59_s21 = sshll.u32 %s184_s2, 4  ;;  %s60_s21 = int_to_ptr.hbm [resolvable:$true] %s59_s21 }
   0xd   :  { %v47_v4 = vsel %vm46_vm0, 1, %v156_v3  ;;  %s57_s1 = sshll.u32 %s157_s0, 4  ;;  %s58_s1 = int_to_ptr.vmem [resolvable:$true] %s57_s1 }
   0xe   :  { %74 = vtanh.f32 %v41_v2  ;;  %v48_v5 = vperm.slane %v47_v4, 0 }
  0x10   :  { %vm49_vm1 = vcmp.eq.s32.totalorder %v48_v5, 1 }
  0x14   :  { %v75_v6 = vpop.eup %74 }
  0x15   :  { %v43_v7 = vmul.f32 0.5, %v75_v6 }
  0x17   :  { %v44_v8 = vadd.f32 0.5, %v43_v7 }
  0x19   :  { %v50_v9 = vsel %vm49_vm1, %v44_v8, %v40_v0 }
  0x1a   :  { %51 = vst [vmem:[#allocation7] sm:$0xf] %v50_v9 }
  0x1b   :  { %62 = dma.vmem_to_hbm [thread:$0]  %s58_s1, 64, %s60_s21, [#allocation4]  }
  0x1c   :  { %152 = dma.done.wait [#allocation4], 64  }
  0x1d   :  { %153 = vsyncadd [#allocation4], 4294967232 }
  0x1e   :  { %67 = vsyncpa [#allocation3], 1 }
  0x1f   :  { %68 = vsyncpa [#allocation6], 1 }
  0x20   :  { %69 = vsyncpa [#allocation4], 1 }

</bundles_post_ra>
